<compile_context>
chip_gen: v7x
topology: tpu7x:2x2x1
jax: 0.10.0
libtpu: 0.0.40
codegen_flags: <defaults>
</compile_context>

<pallas_src>
import jax
import jax.numpy as jnp
from jax.experimental import pallas as pl
from jax.experimental.pallas import tpu as pltpu

# Logical (PyTorch) dims
D_IN, D_H1, D_H2, D_OUT = 5, 64, 32, 5
# Lane-aligned feature width used for the kernel-internal matmuls
PAD = 128
# Narrow (but sublane-friendly) output lane width written back to HBM
D_OUT_PAD = 8
# Batch tiling knobs
MIN_TILE = 256     # prefer tiles of at least this many rows when splitting
TB_MAX = 4096      # largest batch tile (multiple of 8); ~1.7 MiB VMEM/step


def _mlp_kernel(x_ref, w1_ref, b1_ref, w2_ref, b2_ref, w3_ref, b3_ref,
                o_ref, xpad_ref):
    """Whole forward pass on one batch tile: 3 matmuls + bias + ReLU."""
    # Stage the narrow (tb, 5) f32 tile into a lane-aligned bf16 scratch.
    # Only the 5 real lanes are cast & stored; the never-written lanes are
    # masked to zero on reload (no full-tile zero-fill store, no f32 reload).
    xpad_ref[:, :D_IN] = x_ref[...].astype(jnp.bfloat16)
    lane = jax.lax.broadcasted_iota(jnp.int32, (1, PAD), 1)
    xv = xpad_ref[...]                                    # (tb, PAD) bf16
    x = jnp.where(lane < D_IN, xv, jnp.zeros_like(xv))    # padded lanes -> 0

    h1 = jnp.dot(x, w1_ref[...], preferred_element_type=jnp.float32)
    h1 = jnp.maximum(h1 + b1_ref[...], 0.0)               # ReLU(fc1)
    # dropout(p=0.5) -> identity (eval mode)
    h2 = jnp.dot(h1.astype(jnp.bfloat16), w2_ref[...],
                 preferred_element_type=jnp.float32)
    h2 = jnp.maximum(h2 + b2_ref[...], 0.0)               # ReLU(fc2)
    # dropout(p=0.5) -> identity (eval mode)
    out = jnp.dot(h2.astype(jnp.bfloat16), w3_ref[...],
                  preferred_element_type=jnp.float32)     # (tb, PAD) f32
    # Narrow to the 8-lane output block before the store: HBM writeback drops
    # from 512 B/row to 32 B/row.  (Lanes D_OUT..7 are zero by construction.)
    o_ref[...] = (out[:, :D_OUT_PAD] + b3_ref[...]).astype(o_ref.dtype)


def _pad_to(a, rows, cols):
    r, c = a.shape
    return jnp.pad(a, ((0, rows - r), (0, cols - c)))


def prepare_params(params):
    """Pad/cast weights & biases ONCE (hoisted out of the per-call path)."""
    w1, b1, w2, b2, w3, b3 = params
    w1p = _pad_to(w1, PAD, PAD).astype(jnp.bfloat16)    # (5, 64)  -> (128, 128)
    w2p = _pad_to(w2, PAD, PAD).astype(jnp.bfloat16)    # (64, 32) -> (128, 128)
    w3p = _pad_to(w3, PAD, PAD).astype(jnp.bfloat16)    # (32, 5)  -> (128, 128)
    b1p = _pad_to(b1[None, :], 1, PAD)                  # (1, 128) f32
    b2p = _pad_to(b2[None, :], 1, PAD)                  # (1, 128) f32
    b3p = _pad_to(b3[None, :], 1, D_OUT_PAD)            # (1, 8)   f32
    return (w1p, b1p, w2p, b2p, w3p, b3p)


def _round_up(n, m):
    return -(-n // m) * m


def _tiling(batch):
    """Pick (tile_rows, n_tiles).

    Tiles are multiples of 8.  When the batch allows it we emit >= 4 grid
    steps of >= MIN_TILE rows so each v7x TensorCore gets >= 2 pipelined
    steps (and v5e/v6e get >= 4), letting the double-buffered output spec
    hide the writeback DMA behind the next tile's compute.
    """
    b8 = _round_up(max(batch, 1), 8)
    if b8 >= 4 * MIN_TILE:
        n = max(4, -(-b8 // TB_MAX))
        tb = min(TB_MAX, _round_up(-(-b8 // n), 8))
        return tb, -(-b8 // tb)
    if b8 >= 2 * MIN_TILE:
        n = b8 // MIN_TILE
        tb = _round_up(-(-b8 // n), 8)
        return tb, -(-b8 // tb)
    return b8, 1


@jax.jit
def mood_classifier_forward(x, prepped_params):
    """x: (B, 5) float32 -> (B, 5) float32, using pre-padded bf16 params."""
    w1p, b1p, w2p, b2p, w3p, b3p = prepped_params
    B = x.shape[0]
    tb, n_tiles = _tiling(B)
    B_pad = tb * n_tiles

    # Only the batch (sublane) axis is padded; the feature axis stays at 5,
    # so the kernel reads ~20 B/row instead of a 128-lane slab.
    x_p = jnp.pad(x, ((0, B_pad - B), (0, 0)))

    weight_spec = pl.BlockSpec((PAD, PAD), lambda i: (0, 0))   # resident
    bias_spec = pl.BlockSpec((1, PAD), lambda i: (0, 0))       # resident

    out_p = pl.pallas_call(
        _mlp_kernel,
        out_shape=jax.ShapeDtypeStruct((B_pad, D_OUT_PAD), jnp.float32),
        grid=(n_tiles,),
        in_specs=[
            pl.BlockSpec((tb, D_IN), lambda i: (i, 0)),  # x tile, narrow lanes
            weight_spec, bias_spec,                      # fc1
            weight_spec, bias_spec,                      # fc2
            weight_spec,                                 # fc3 weight
            pl.BlockSpec((1, D_OUT_PAD), lambda i: (0, 0)),  # fc3 bias (1, 8)
        ],
        # Narrow 8-lane output block (== full last dim) -> 32 B/row writeback.
        out_specs=pl.BlockSpec((tb, D_OUT_PAD), lambda i: (i, 0)),
        scratch_shapes=[pltpu.VMEM((tb, PAD), jnp.bfloat16)],
        compiler_params=pltpu.CompilerParams(
            dimension_semantics=("parallel",)),
    )(x_p, w1p, b1p, w2p, b2p, w3p, b3p)

    return out_p[:B, :D_OUT]


def init_params(key):
    """Deterministic init mimicking nn.Linear default (U[-1/sqrt(fan_in), +])."""
    def linear(k, fan_in, fan_out):
        kw, kb = jax.random.split(k)
        bound = 1.0 / jnp.sqrt(fan_in)
        # Stored as (in, out) so forward is x @ W (== PyTorch x @ W.T).
        w = jax.random.uniform(kw, (fan_in, fan_out), jnp.float32, -bound, bound)
        b = jax.random.uniform(kb, (fan_out,), jnp.float32, -bound, bound)
        return w, b

    k1, k2, k3 = jax.random.split(key, 3)
    w1, b1 = linear(k1, D_IN, D_H1)
    w2, b2 = linear(k2, D_H1, D_H2)
    w3, b3 = linear(k3, D_H2, D_OUT)
    return (w1, b1, w2, b2, w3, b3)


def reference_forward(x, params):
    """Pure-JAX f32 reference (inference dropout = identity)."""
    w1, b1, w2, b2, w3, b3 = params
    h = jnp.maximum(x @ w1 + b1, 0.0)
    h = jnp.maximum(h @ w2 + b2, 0.0)
    return h @ w3 + b3


if __name__ == "__main__":
    key = jax.random.PRNGKey(0)
    kp, kx = jax.random.split(key)
    params = init_params(kp)
    prepped = prepare_params(params)   # padding + bf16 cast done once, not per call

    # Exercise: single-tile grid (B=8), single tile with row padding (B=40),
    # and a 4-tile grid with row padding (B=1237 -> 4 tiles of 312 rows).
    for B in (8, 40, 1237):
        x = jax.random.normal(jax.random.fold_in(kx, B), (B, D_IN), jnp.float32)
        out = jax.block_until_ready(mood_classifier_forward(x, prepped))
        ref = reference_forward(x, params)
        assert out.shape == (B, D_OUT), out.shape
        # bf16 weights/activations with f32 accumulation -> loosened tolerance
        # vs. the f32 reference.
        assert jnp.allclose(out, ref, atol=5e-2, rtol=5e-2), float(
            jnp.max(jnp.abs(out - ref)))

    print("KERNEL_OK")
</pallas_src>

<mosaic_0001>
module attributes {stable_mosaic.version = 11 : i64} {
  func.func @_mlp_kernel(%arg0: i32, %arg1: memref<8x5xf32, #tpu.memory_space<vmem>>, %arg2: memref<128x128xbf16, #tpu.memory_space<vmem>>, %arg3: memref<1x128xf32, #tpu.memory_space<vmem>>, %arg4: memref<128x128xbf16, #tpu.memory_space<vmem>>, %arg5: memref<1x128xf32, #tpu.memory_space<vmem>>, %arg6: memref<128x128xbf16, #tpu.memory_space<vmem>>, %arg7: memref<1x8xf32, #tpu.memory_space<vmem>>, %arg8: memref<8x8xf32, #tpu.memory_space<vmem>>, %arg9: memref<8x128xbf16, #tpu.memory_space<vmem>>) attributes {dimension_semantics = [#tpu.dimension_semantics<parallel>], iteration_bounds = array<i64: 1>, scalar_prefetch = 0 : i64, scratch_operands = 1 : i64, tpu.core_type = #tpu.core_type<tc>, window_params = [{transform_indices = @transform_0, window_bounds = array<i64: 8, 5>}, {pipeline_mode = #tpu.pipeline_mode<synchronous>, transform_indices = @transform_1, window_bounds = array<i64: 128, 128>}, {pipeline_mode = #tpu.pipeline_mode<synchronous>, transform_indices = @transform_2, window_bounds = array<i64: 1, 128>}, {pipeline_mode = #tpu.pipeline_mode<synchronous>, transform_indices = @transform_3, window_bounds = array<i64: 128, 128>}, {pipeline_mode = #tpu.pipeline_mode<synchronous>, transform_indices = @transform_4, window_bounds = array<i64: 1, 128>}, {pipeline_mode = #tpu.pipeline_mode<synchronous>, transform_indices = @transform_5, window_bounds = array<i64: 128, 128>}, {pipeline_mode = #tpu.pipeline_mode<synchronous>, transform_indices = @transform_6, window_bounds = array<i64: 1, 8>}, {transform_indices = @transform_7, window_bounds = array<i64: 8, 8>}]} {
    %c0 = arith.constant 0 : index
    %c0_0 = arith.constant 0 : index
    %0 = vector.load %arg1[%c0, %c0_0] : memref<8x5xf32, #tpu.memory_space<vmem>>, vector<8x5xf32>
    %1 = arith.truncf %0 : vector<8x5xf32> to vector<8x5xbf16>
    %c0_1 = arith.constant 0 : index
    %c0_2 = arith.constant 0 : index
    %2 = vector.load %arg9[%c0_1, %c0_2] : memref<8x128xbf16, #tpu.memory_space<vmem>>, vector<8x5xbf16>
    tpu.vector_store %arg9[%c0_1, %c0_2], %1 {strides = array<i32>} : memref<8x128xbf16, #tpu.memory_space<vmem>>, vector<8x5xbf16>,
    %3 = tpu.iota {dimensions = array<i32: 1>} : vector<1x128xi32>
    %c0_3 = arith.constant 0 : index
    %c0_4 = arith.constant 0 : index
    %4 = vector.load %arg9[%c0_3, %c0_4] : memref<8x128xbf16, #tpu.memory_space<vmem>>, vector<8x128xbf16>
    %c5_i32 = arith.constant 5 : i32
    %5 = vector.broadcast %c5_i32 : i32 to vector<1x128xi32>
    %6 = arith.cmpi slt, %3, %5 : vector<1x128xi32>
    %cst = arith.constant 0.000000e+00 : bf16
    %7 = vector.broadcast %cst : bf16 to vector<8x128xbf16>
    %8 = vector.shape_cast %6 : vector<1x128xi1> to vector<1x128xi1>
    %9 = vector.broadcast %8 : vector<1x128xi1> to vector<8x128xi1>
    %10 = arith.select %9, %4, %7 : vector<8x128xi1>, vector<8x128xbf16>
    %c0_5 = arith.constant 0 : index
    %c0_6 = arith.constant 0 : index
    %11 = vector.load %arg2[%c0_5, %c0_6] : memref<128x128xbf16, #tpu.memory_space<vmem>>, vector<128x128xbf16>
    %cst_7 = arith.constant dense<0.000000e+00> : vector<8x128xf32>
    %12 = tpu.matmul %10, %11, %cst_7 {dimension_numbers = #tpu.dot_dimension_numbers<[1], [0], [0], [1], [0, 0, 1, 1], [], []>} : vector<8x128xbf16>, vector<128x128xbf16>, vector<8x128xf32> -> vector<8x128xf32>
    %c0_8 = arith.constant 0 : index
    %c0_9 = arith.constant 0 : index
    %13 = vector.load %arg3[%c0_8, %c0_9] : memref<1x128xf32, #tpu.memory_space<vmem>>, vector<1x128xf32>
    %14 = vector.broadcast %13 : vector<1x128xf32> to vector<8x128xf32>
    %15 = arith.addf %12, %14 : vector<8x128xf32>
    %cst_10 = arith.constant 0.000000e+00 : f32
    %16 = vector.broadcast %cst_10 : f32 to vector<8x128xf32>
    %17 = arith.maximumf %15, %16 : vector<8x128xf32>
    %18 = arith.truncf %17 : vector<8x128xf32> to vector<8x128xbf16>
    %c0_11 = arith.constant 0 : index
    %c0_12 = arith.constant 0 : index
    %19 = vector.load %arg4[%c0_11, %c0_12] : memref<128x128xbf16, #tpu.memory_space<vmem>>, vector<128x128xbf16>
    %cst_13 = arith.constant dense<0.000000e+00> : vector<8x128xf32>
    %20 = tpu.matmul %18, %19, %cst_13 {dimension_numbers = #tpu.dot_dimension_numbers<[1], [0], [0], [1], [0, 0, 1, 1], [], []>} : vector<8x128xbf16>, vector<128x128xbf16>, vector<8x128xf32> -> vector<8x128xf32>
    %c0_14 = arith.constant 0 : index
    %c0_15 = arith.constant 0 : index
    %21 = vector.load %arg5[%c0_14, %c0_15] : memref<1x128xf32, #tpu.memory_space<vmem>>, vector<1x128xf32>
    %22 = vector.broadcast %21 : vector<1x128xf32> to vector<8x128xf32>
    %23 = arith.addf %20, %22 : vector<8x128xf32>
    %cst_16 = arith.constant 0.000000e+00 : f32
    %24 = vector.broadcast %cst_16 : f32 to vector<8x128xf32>
    %25 = arith.maximumf %23, %24 : vector<8x128xf32>
    %26 = arith.truncf %25 : vector<8x128xf32> to vector<8x128xbf16>
    %c0_17 = arith.constant 0 : index
    %c0_18 = arith.constant 0 : index
    %27 = vector.load %arg6[%c0_17, %c0_18] : memref<128x128xbf16, #tpu.memory_space<vmem>>, vector<128x128xbf16>
    %cst_19 = arith.constant dense<0.000000e+00> : vector<8x128xf32>
    %28 = tpu.matmul %26, %27, %cst_19 {dimension_numbers = #tpu.dot_dimension_numbers<[1], [0], [0], [1], [0, 0, 1, 1], [], []>} : vector<8x128xbf16>, vector<128x128xbf16>, vector<8x128xf32> -> vector<8x128xf32>
    %29 = vector.extract_strided_slice %28 {offsets = [0, 0], sizes = [8, 8], strides = [1, 1]} : vector<8x128xf32> to vector<8x8xf32>
    %c0_20 = arith.constant 0 : index
    %c0_21 = arith.constant 0 : index
    %30 = vector.load %arg7[%c0_20, %c0_21] : memref<1x8xf32, #tpu.memory_space<vmem>>, vector<1x8xf32>
    %31 = vector.broadcast %30 : vector<1x8xf32> to vector<8x8xf32>
    %32 = arith.addf %29, %31 : vector<8x8xf32>
    %c0_22 = arith.constant 0 : index
    %c0_23 = arith.constant 0 : index
    %33 = vector.load %arg8[%c0_22, %c0_23] : memref<8x8xf32, #tpu.memory_space<vmem>>, vector<8x8xf32>
    tpu.vector_store %arg8[%c0_22, %c0_23], %32 {strides = array<i32>} : memref<8x8xf32, #tpu.memory_space<vmem>>, vector<8x8xf32>,
    return
  }
  func.func @transform_0(%arg0: i32) -> (i32, i32) {
    %c0_i32 = arith.constant 0 : i32
    %c0_i32_0 = arith.constant 0 : i32
    return %arg0, %c0_i32 : i32, i32
  }
  func.func @transform_1(%arg0: i32) -> (i32, i32) {
    %c0_i32 = arith.constant 0 : i32
    %c0_i32_0 = arith.constant 0 : i32
    %c0_i32_1 = arith.constant 0 : i32
    return %c0_i32, %c0_i32_0 : i32, i32
  }
  func.func @transform_2(%arg0: i32) -> (i32, i32) {
    %c0_i32 = arith.constant 0 : i32
    %c0_i32_0 = arith.constant 0 : i32
    %c0_i32_1 = arith.constant 0 : i32
    return %c0_i32, %c0_i32_0 : i32, i32
  }
  func.func @transform_3(%arg0: i32) -> (i32, i32) {
    %c0_i32 = arith.constant 0 : i32
    %c0_i32_0 = arith.constant 0 : i32
    %c0_i32_1 = arith.constant 0 : i32
    return %c0_i32, %c0_i32_0 : i32, i32
  }
  func.func @transform_4(%arg0: i32) -> (i32, i32) {
    %c0_i32 = arith.constant 0 : i32
    %c0_i32_0 = arith.constant 0 : i32
    %c0_i32_1 = arith.constant 0 : i32
    return %c0_i32, %c0_i32_0 : i32, i32
  }
  func.func @transform_5(%arg0: i32) -> (i32, i32) {
    %c0_i32 = arith.constant 0 : i32
    %c0_i32_0 = arith.constant 0 : i32
    %c0_i32_1 = arith.constant 0 : i32
    return %c0_i32, %c0_i32_0 : i32, i32
  }
  func.func @transform_6(%arg0: i32) -> (i32, i32) {
    %c0_i32 = arith.constant 0 : i32
    %c0_i32_0 = arith.constant 0 : i32
    %c0_i32_1 = arith.constant 0 : i32
    return %c0_i32, %c0_i32_0 : i32, i32
  }
  func.func @transform_7(%arg0: i32) -> (i32, i32) {
    %c0_i32 = arith.constant 0 : i32
    %c0_i32_0 = arith.constant 0 : i32
    return %arg0, %c0_i32 : i32, i32
  }
}

</mosaic_0001>

<bundles_post_ra>
// kernel: mood_classifier_forward.1
= control target key start
LH: loop header
LB: loop body
LE: loop exit
PB: predicated region body
PF: predicated region fallthrough
CT: control target
= control target key end

     0   :  { %12 = vsyncpa [#allocation4], 0  ;;  %s872_s0 = inlined_call_operand.hbm [shape: f32[8,5], index: 0, kind: input, shape index: {}]   ;;  %s873_s1 = inlined_call_operand.hbm [shape: bf16[128,128], index: 1, kind: input, shape index: {}]   ;;  %s874_s2 = inlined_call_operand.vmem [shape: f32[1,128], index: 2, kind: input, shape index: {}]   ;;  %s875_s3 = inlined_call_operand.hbm [shape: bf16[128,128], index: 3, kind: input, shape index: {}]   ;;  %s876_s4 = inlined_call_operand.vmem [shape: f32[1,128], index: 4, kind: input, shape index: {}]   ;;  %s877_s5 = inlined_call_operand.hbm [shape: bf16[128,128], index: 5, kind: input, shape index: {}]   ;;  %s878_s6 = inlined_call_operand.vmem [shape: f32[1,8], index: 6, kind: input, shape index: {}]   ;;  %s879_s7 = inlined_call_operand.hbm [shape: f32[8,8], index: 7, kind: output, shape index: {}]  }
   0x1   :  { %13 = vsyncpa [#allocation7], 0 }
   0x2   :  { %14 = vsyncpa [#allocation10], 0 }
   0x3   :  { %15 = vsyncpa [#allocation5], 0  ;;  %s715_s24 = smov [#allocation6]   ;;  %s597_s28 = scalar_lea.hbm %s873_s1, 1024 }
   0x4   :  { %s31_s25 = sshll.u32 %s715_s24, 4  ;;  %p598_p0 = scmp.ne.s32.totalorder %s873_s1, %s597_s28  ;;  %s32_s25 = int_to_ptr.vmem [resolvable:$true] %s31_s25 }
   0x5   :  { %p601_p1 = scmp.lt.u32.totalorder %s597_s28, %s873_s1 }
   0x7   :  { %p603_p2 = pnand %p601_p1, %p598_p0 }
   0x9   :  { %606 = shalt.err (!%p603_p2)
}
   0xa   :  { %s607_s10 = scalar_lea.vmem %s32_s25, 1024  ;;  %p612_p4 = scmp.lt.s32.totalorder %s32_s25, %s32_s25 }
   0xb   :  { %p608_p3 = scmp.ne.s32.totalorder %s32_s25, %s607_s10  ;;  %p613_p5 = scmp.lt.s32.totalorder %s607_s10, %s607_s10 }
   0xd   :  { %p614_p6 = por %p613_p5, %p612_p4 }
   0xf   :  { %p615_p7 = pnand %p614_p6, %p608_p3 }
  0x11   :  { %618 = shalt.err (!%p615_p7)
}
  0x12   :  { %s716_s11 = smov 64   ;;  %s717_s12 = smov 4  }
  0x13   :  { %37 = dma.hbm_to_vmem [thread:$0]  %s873_s1, 1024, %s32_s25, [#allocation7], %s716_s11, %s716_s11, %s717_s12  }
  0x14   :  { %s718_s15 = smov [#allocation3]   ;;  %s719_s17 = smov [#allocation8]  }
  0x15   :  { %s22_s16 = sshll.u32 %s718_s15, 4  ;;  %s45_s18 = sshll.u32 %s719_s17, 4  ;;  %s23_s16 = int_to_ptr.vmem [resolvable:$true] %s22_s16  ;;  %s46_s18 = int_to_ptr.vmem [resolvable:$true] %s45_s18 }
  0x16   :  { %s619_s21 = scalar_lea.hbm %s872_s0, 128 }
  0x17   :  { %p620_p8 = scmp.ne.s32.totalorder %s872_s0, %s619_s21  ;;  %p623_p9 = scmp.lt.u32.totalorder %s619_s21, %s872_s0 }
  0x19   :  { %p625_p10 = pnand %p623_p9, %p620_p8 }
  0x1b   :  { %628 = shalt.err (!%p625_p10)
}
  0x1c   :  { %s629_s1 = scalar_lea.vmem %s23_s16, 128  ;;  %p634_p12 = scmp.lt.s32.totalorder %s23_s16, %s23_s16 }
  0x1d   :  { %p630_p11 = scmp.ne.s32.totalorder %s23_s16, %s629_s1  ;;  %p635_p13 = scmp.lt.s32.totalorder %s629_s1, %s629_s1 }
  0x1f   :  { %p636_p0 = por %p635_p13, %p634_p12 }
  0x21   :  { %p637_p1 = pnand %p636_p0, %p630_p11 }
  0x23   :  { %640 = shalt.err (!%p637_p1)
}
  0x24   :  { %25 = dma.hbm_to_vmem [thread:$0]  %s872_s0, 128, %s23_s16, [#allocation4]  }
  0x25   :  { %s641_s30 = scalar_lea.hbm %s875_s3, 1024 }
  0x26   :  { %p642_p2 = scmp.ne.s32.totalorder %s875_s3, %s641_s30  ;;  %p645_p3 = scmp.lt.u32.totalorder %s641_s30, %s875_s3 }
  0x28   :  { %p647_p4 = pnand %p645_p3, %p642_p2 }
  0x2a   :  { %650 = shalt.err (!%p647_p4)
}
  0x2b   :  { %s651_s14 = scalar_lea.vmem %s46_s18, 1024  ;;  %p656_p6 = scmp.lt.s32.totalorder %s46_s18, %s46_s18 }
  0x2c   :  { %p652_p5 = scmp.ne.s32.totalorder %s46_s18, %s651_s14  ;;  %p657_p7 = scmp.lt.s32.totalorder %s651_s14, %s651_s14 }
  0x2e   :  { %p658_p8 = por %p657_p7, %p656_p6 }
  0x30   :  { %p659_p9 = pnand %p658_p8, %p652_p5 }
  0x32   :  { %662 = shalt.err (!%p659_p9)
}
  0x33   :  { %51 = dma.hbm_to_vmem [thread:$0]  %s875_s3, 1024, %s46_s18, [#allocation7], %s716_s11, %s716_s11, %s717_s12  }
  0x34   :  { %s720_s16 = smov [#allocation9]   ;;  %s663_s21 = scalar_lea.hbm %s877_s5, 1024 }
  0x35   :  { %s59_s17 = sshll.u32 %s720_s16, 4  ;;  %p664_p10 = scmp.ne.s32.totalorder %s877_s5, %s663_s21  ;;  %s60_s17 = int_to_ptr.vmem [resolvable:$true] %s59_s17 }
  0x36   :  { %p667_p11 = scmp.lt.u32.totalorder %s663_s21, %s877_s5 }
  0x38   :  { %p669_p12 = pnand %p667_p11, %p664_p10 }
  0x3a   :  { %672 = shalt.err (!%p669_p12)
}
  0x3b   :  { %s673_s1 = scalar_lea.vmem %s60_s17, 1024  ;;  %p678_p0 = scmp.lt.s32.totalorder %s60_s17, %s60_s17 }
  0x3c   :  { %p674_p13 = scmp.ne.s32.totalorder %s60_s17, %s673_s1  ;;  %p679_p1 = scmp.lt.s32.totalorder %s673_s1, %s673_s1 }
  0x3e   :  { %p680_p2 = por %p679_p1, %p678_p0 }
  0x40   :  { %p681_p3 = pnand %p680_p2, %p674_p13 }
  0x42   :  { %684 = shalt.err (!%p681_p3)
}
  0x43   :  { %65 = dma.hbm_to_vmem [thread:$0]  %s877_s5, 1024, %s60_s17, [#allocation10], %s716_s11, %s716_s11, %s717_s12  }
  0x44   :  { %707 = dma.done.wait [#allocation4], 128  }
  0x45   :  { %708 = vsyncadd [#allocation4], 4294967168 }
  0x46   :  { %709 = dma.done.wait [#allocation7], 2048  }
  0x47   :  { %710 = vsyncadd [#allocation7], 4294965248 }
  0x48   :  { %711 = dma.done.wait [#allocation10], 1024  }
  0x49   :  { %712 = vsyncadd [#allocation10], 4294966272  ;;  %v721_v0 = vmov 0.0   ;;  %vm722_vm0 = vmmov 0   ;;  %v573_v1 = vld [vmem:[#allocation6] sm:$0xff]   ;;  %v574_v2 = vld [vmem:[#allocation6 + $0x8] sm:$0xff]   ;;  %v85_v11 = vlaneseq }
  0x4a   :  { %504 = vmatprep.subr.bf16.mxu0 %v721_v0  ;;  %520 = vmatprep.mubr.msk.bf16.mxu0 %vm722_vm0, %v721_v0  ;;  %v575_v3 = vld [vmem:[#allocation6 + $0x10] sm:$0xff]   ;;  %v81_v4 = vld [vmem:[#allocation3] sm:$0xff]  ;;  %vm83_vm1 = vcmask 35840   ;;  %v581_v6 = vld [vmem:[#allocation8] sm:$0xff]   ;;  %s723_s28 = smov [#allocation11]   ;;  %vm431_vm4 = vcmask 64512  }
  0x4b   :  { %524 = vmatprep.subr.bf16.mxu1 %v721_v0  ;;  %540 = vmatprep.mubr.msk.bf16.mxu1 %vm722_vm0, %v721_v0  ;;  %v82_v5 = vpack.c.bf16 %v81_v4, %v81_v4  ;;  %v576_v7 = vld [vmem:[#allocation6 + $0x18] sm:$0xff]   ;;  %v582_v8 = vld [vmem:[#allocation8 + $0x8] sm:$0xff]   ;;  %v577_v9 = vld [vmem:[#allocation6 + $0x20] sm:$0xff]   ;;  %v86_v13 = vand.u32 127, %v85_v11  ;;  %s439_s29 = sshll.u32 %s723_s28, 4  ;;  %s440_s29 = int_to_ptr.vmem [resolvable:$true] %s439_s29 }
  0x4c   :  { %505 = vmatpush3.bf16.msra.mxu0 %v573_v1  ;;  %525 = vmatpush3.bf16.msra.mxu1 %v581_v6  ;;  %v583_v10 = vld [vmem:[#allocation8 + $0x10] sm:$0xff]   ;;  %v578_v12 = vld [vmem:[#allocation6 + $0x28] sm:$0xff]   ;;  %v584_v14 = vld [vmem:[#allocation8 + $0x18] sm:$0xff]   ;;  %p690_p5 = scmp.lt.s32.totalorder %s440_s29, %s440_s29 }
  0x4d   :  { %506 = vmatprep.subr.bf16.mxu0 %v721_v0  ;;  %84 = vst.msk [vmem:[#allocation2] sm:$0xf] %vm83_vm1, %v82_v5  ;;  %526 = vmatprep.subr.bf16.mxu1 %v721_v0  ;;  %v579_v15 = vld [vmem:[#allocation6 + $0x30] sm:$0xff]   ;;  %v585_v16 = vld [vmem:[#allocation8 + $0x20] sm:$0xff]   ;;  %vm88_vm2 = vcmp.lt.s32.totalorder %v86_v13, 5  ;;  %v580_v17 = vld [vmem:[#allocation6 + $0x38] sm:$0xff]  }
  0x4e   :  { %vm91_vm3 = vmpackc.low %vm88_vm2, %vm88_vm2  ;;  %v586_v19 = vld [vmem:[#allocation8 + $0x28] sm:$0xff]   ;;  %v587_v21 = vld [vmem:[#allocation8 + $0x30] sm:$0xff]  }
  0x4f   :  { %v588_v22 = vld [vmem:[#allocation8 + $0x38] sm:$0xff]   ;;  %v589_v23 = vld [vmem:[#allocation9] sm:$0xff]   ;;  %v590_v24 = vld [vmem:[#allocation9 + $0x8] sm:$0xff]  }
  0x50   :  { %507 = vmatpush3.bf16.msra.mxu0 %v574_v2  ;;  %527 = vmatpush3.bf16.msra.mxu1 %v582_v8  ;;  %v591_v25 = vld [vmem:[#allocation9 + $0x10] sm:$0xff]   ;;  %v592_v26 = vld [vmem:[#allocation9 + $0x18] sm:$0xff]   ;;  %v593_v27 = vld [vmem:[#allocation9 + $0x20] sm:$0xff]  }
  0x51   :  { %508 = vmatprep.subr.bf16.mxu0 %v721_v0  ;;  %528 = vmatprep.subr.bf16.mxu1 %v721_v0  ;;  %v594_v28 = vld [vmem:[#allocation9 + $0x28] sm:$0xff]   ;;  %v450_v29 = vld [vmem:[%s874_s2] ss:$0 sm:$0xff]  ;;  %v596_v38 = vld [vmem:[#allocation9 + $0x38] sm:$0xff]  }
  0x52   :  { %v595_v37 = vld [vmem:[#allocation9 + $0x30] sm:$0xff]  }
  0x53   :  { %v459_v39 = vld [vmem:[%s876_s4] ss:$0 sm:$0xff]  ;;  %s685_s4 = scalar_lea.vmem %s440_s29, 128 }
  0x54   :  { %509 = vmatpush3.bf16.msra.mxu0 %v575_v3  ;;  %529 = vmatpush3.bf16.msra.mxu1 %v583_v10  ;;  %v87_v18 = vld [vmem:[#allocation2] sm:$0xf]  ;;  %p686_p4 = scmp.ne.s32.totalorder %s440_s29, %s685_s4  ;;  %p691_p6 = scmp.lt.s32.totalorder %s685_s4, %s685_s4 }
  0x55   :  { %510 = vmatprep.subr.bf16.mxu0 %v721_v0  ;;  %530 = vmatprep.subr.bf16.mxu1 %v721_v0  ;;  %v92_v20 = vsel %vm91_vm3, %v87_v18, 0  ;;  %v476_v47 = vld [vmem:[%s878_s6] ss:$0 sm:$0xff] }
  0x56   :  { %p692_p7 = por %p691_p6, %p690_p5 }
  0x58   :  { %511 = vmatpush3.bf16.msra.mxu0 %v576_v7  ;;  %531 = vmatpush3.bf16.msra.mxu1 %v584_v14  ;;  %p693_p8 = pnand %p692_p7, %p686_p4 }
  0x59   :  { %512 = vmatprep.subr.bf16.mxu0 %v721_v0  ;;  %532 = vmatprep.subr.bf16.mxu1 %v721_v0 }
  0x5c   :  { %513 = vmatpush3.bf16.msra.mxu0 %v577_v9  ;;  %533 = vmatpush3.bf16.msra.mxu1 %v585_v16 }
  0x5d   :  { %514 = vmatprep.subr.bf16.mxu0 %v721_v0  ;;  %534 = vmatprep.subr.bf16.mxu1 %v721_v0 }
  0x60   :  { %515 = vmatpush3.bf16.msra.mxu0 %v578_v12  ;;  %535 = vmatpush3.bf16.msra.mxu1 %v586_v19 }
  0x61   :  { %516 = vmatprep.subr.bf16.mxu0 %v721_v0  ;;  %536 = vmatprep.subr.bf16.mxu1 %v721_v0 }
  0x64   :  { %517 = vmatpush3.bf16.msra.mxu0 %v579_v15  ;;  %537 = vmatpush3.bf16.msra.mxu1 %v587_v21 }
  0x65   :  { %518 = vmatprep.subr.bf16.mxu0 %v721_v0  ;;  %538 = vmatprep.subr.bf16.mxu1 %v721_v0 }
  0x68   :  { %519 = vmatpush3.bf16.msra.mxu0 %v580_v17  ;;  %539 = vmatpush3.bf16.msra.mxu1 %v588_v22 }
  0x69   :  { %544 = vmatprep.subr.bf16.mxu0 %v721_v0 }
  0x6b   :  { %521 = vmatmul.mubr.bf16.vlgmr.msra.gmra.mrb[0].mxu0 %v92_v20 }
  0x6c   :  { %560 = vmatprep.mubr.msk.bf16.mxu0 %vm722_vm0, %v721_v0  ;;  %545 = vmatpush3.bf16.msra.mxu0 %v589_v23 }
  0x6d   :  { %546 = vmatprep.subr.bf16.mxu0 %v721_v0 }
  0x70   :  { %547 = vmatpush3.bf16.msra.mxu0 %v590_v24 }
  0x71   :  { %548 = vmatprep.subr.bf16.mxu0 %v721_v0 }
  0x74   :  { %549 = vmatpush3.bf16.msra.mxu0 %v591_v25 }
  0x75   :  { %550 = vmatprep.subr.bf16.mxu0 %v721_v0 }
  0x78   :  { %551 = vmatpush3.bf16.msra.mxu0 %v592_v26 }
  0x79   :  { %552 = vmatprep.subr.bf16.mxu0 %v721_v0 }
  0x7c   :  { %553 = vmatpush3.bf16.msra.mxu0 %v593_v27 }
  0x7d   :  { %554 = vmatprep.subr.bf16.mxu0 %v721_v0 }
  0x80   :  { %555 = vmatpush3.bf16.msra.mxu0 %v594_v28 }
  0x81   :  { %556 = vmatprep.subr.bf16.mxu0 %v721_v0 }
  0x84   :  { %557 = vmatpush3.bf16.msra.mxu0 %v595_v37 }
  0x85   :  { %558 = vmatprep.subr.bf16.mxu0 %v721_v0 }
  0x88   :  { %559 = vmatpush3.bf16.msra.mxu0 %v596_v38 }
 0x13e   :  { %v198_v30 = vpop.f32.mrb[0].mxu0 }
 0x13f   :  { %v199_v31 = vadd.f32 %v450_v29, %v198_v30  ;;  %v522_v32 = vpop.f32.mrb[1].mxu0 }
 0x140   :  { %v201_v33 = vpop.f32.mrb[2].mxu0 }
 0x141   :  { %v204_v34 = vmax.f32 %v199_v31, 0.0  ;;  %v523_v35 = vpop.f32.mrb[3].mxu0 }
 0x143   :  { %v205_v36 = vpack.c.bf16 %v204_v34, %v204_v34 }
 0x145   :  { %541 = vmatmul.mubr.bf16.vlgmr.msra.gmra.mrb[0].mxu1 %v205_v36 }
 0x218   :  { %v311_v40 = vpop.f32.mrb[0].mxu1 }
 0x219   :  { %v312_v41 = vadd.f32 %v459_v39, %v311_v40  ;;  %v542_v42 = vpop.f32.mrb[1].mxu1 }
 0x21a   :  { %v314_v43 = vpop.f32.mrb[2].mxu1 }
 0x21b   :  { %v317_v44 = vmax.f32 %v312_v41, 0.0  ;;  %v543_v45 = vpop.f32.mrb[3].mxu1 }
 0x21d   :  { %v318_v46 = vpack.c.bf16 %v317_v44, %v317_v44 }
 0x21f   :  { %561 = vmatmul.mubr.bf16.vlgmr.msra.gmra.mrb[4].mxu0 %v318_v46 }
 0x2f2   :  { %v417_v48 = vpop.f32.mrb[4].mxu0 }
 0x2f3   :  { %v430_v49 = vadd.f32 %v476_v47, %v417_v48  ;;  %v562_v50 = vpop.f32.mrb[5].mxu0 }
 0x2f4   :  { %v420_v51 = vpop.f32.mrb[6].mxu0 }
 0x2f5   :  { %v563_v52 = vpop.f32.mrb[7].mxu0  ;;  %432 = vst.msk [vmem:[#allocation11] sm:$0xff] %vm431_vm4, %v430_v49 }
 0x2f6   :  { %696 = shalt.err (!%p693_p8)
}
 0x2f7   :  { %s697_s6 = scalar_lea.hbm %s879_s7, 128 }
 0x2f8   :  { %p698_p9 = scmp.ne.s32.totalorder %s879_s7, %s697_s6  ;;  %p701_p10 = scmp.lt.u32.totalorder %s697_s6, %s879_s7 }
 0x2fa   :  { %p703_p11 = pnand %p701_p10, %p698_p9 }
 0x2fc   :  { %706 = shalt.err (!%p703_p11)
}
 0x2fd   :  { %442 = dma.vmem_to_hbm [thread:$0]  %s440_s29, 128, %s879_s7, [#allocation5]  }
 0x2fe   :  { %713 = dma.done.wait [#allocation5], 128  }
 0x2ff   :  { %714 = vsyncadd [#allocation5], 4294967168 }
 0x300   :  { %446 = vsyncpa [#allocation4], 1 }
 0x301   :  { %447 = vsyncpa [#allocation7], 1 }
 0x302   :  { %448 = vsyncpa [#allocation10], 1 }
 0x303   :  { %449 = vsyncpa [#allocation5], 1 }

</bundles_post_ra>
